<compile_context>
chip_gen: v7x
topology: tpu7x:2x2x1
jax: 0.10.0
libtpu: 0.0.40
codegen_flags: <defaults>
</compile_context>

<pallas_src>
import jax
import jax.numpy as jnp
from jax.experimental import pallas as pl
from jax.experimental.pallas import tpu as pltpu

NUM_CELLS = 36      # num_cells = 36, adj = np.eye(36) in the driver
STATE_SIZE = 1      # forward() only shape-checks for state_size == 1
GCN_HIDDEN = 32
ACTION_SIZE = 4
FC_HIDDEN = 128     # fc1/fc2 width; also the lane-dense padding for gcn/action dims

M_PAD = 48          # 36 rows padded to a bf16-sublane multiple (16) / f32 multiple (8)

# v_slab row layout (f32, lanes zero-padded to 128)
ROW_WG, ROW_BG, ROW_B1, ROW_B2, ROW_B3 = 0, 1, 2, 3, 4


# ----------------------------- kernels -------------------------------------

def _mlp_head(g, w_ref, v_ref):
    """fc1+relu, fc2+relu, fc3 on a (rows, 128) f32 block; bf16 MXU operands,
    f32 accumulation and bias/relu."""
    b1 = v_ref[ROW_B1:ROW_B1 + 1, :]
    b2 = v_ref[ROW_B2:ROW_B2 + 1, :]
    b3 = v_ref[ROW_B3:ROW_B3 + 1, :]
    h1 = jnp.maximum(
        jnp.dot(g.astype(jnp.bfloat16), w_ref[0],
                preferred_element_type=jnp.float32) + b1, 0.0)
    h2 = jnp.maximum(
        jnp.dot(h1.astype(jnp.bfloat16), w_ref[1],
                preferred_element_type=jnp.float32) + b2, 0.0)
    return jnp.dot(h2.astype(jnp.bfloat16), w_ref[2],
                   preferred_element_type=jnp.float32) + b3


def dqn_rows_kernel(x_ref, w_ref, v_ref, out_ref):
    """Identity-adjacency path: adj @ x is a no-op, so the GCN collapses to a
    VPU broadcast multiply.  Per-row, so the same kernel serves the single-state
    call and every tile of the batched grid."""
    wg = v_ref[ROW_WG:ROW_WG + 1, :]
    bg = v_ref[ROW_BG:ROW_BG + 1, :]
    g = jnp.maximum(x_ref[...] * wg + bg, 0.0)            # (rows, 128) f32
    out_ref[...] = _mlp_head(g, w_ref, v_ref)


def dqn_adj_kernel(x_ref, adj_ref, w_ref, v_ref, out_ref):
    """General-adjacency path.  relu((adj @ x^T) @ Wg + bg) reassociated as
    relu(adj @ (x col * wg row) + bg): the two degenerate matmuls (N=1 matvec,
    K=1 outer product) become one well-shaped adj @ g_in matmul."""
    wg = v_ref[ROW_WG:ROW_WG + 1, :]
    bg = v_ref[ROW_BG:ROW_BG + 1, :]
    g_in = (x_ref[...] * wg).astype(jnp.bfloat16)          # (48, 128) bf16
    g = jnp.maximum(
        jnp.dot(adj_ref[...], g_in, preferred_element_type=jnp.float32) + bg, 0.0)
    out_ref[...] = _mlp_head(g, w_ref, v_ref)


# --------------------------- params / packing -------------------------------

def init_params(key):
    """Deterministic PyTorch-style Linear init: U(-1/sqrt(fan_in), 1/sqrt(fan_in))."""
    ks = jax.random.split(key, 8)

    def lin(kw, kb, fan_in, fan_out):
        bound = 1.0 / float(fan_in) ** 0.5
        w = jax.random.uniform(kw, (fan_in, fan_out), jnp.float32, -bound, bound)
        b = jax.random.uniform(kb, (1, fan_out), jnp.float32, -bound, bound)
        return w, b

    wg, bg = lin(ks[0], ks[1], STATE_SIZE, GCN_HIDDEN)
    w1, b1 = lin(ks[2], ks[3], GCN_HIDDEN * STATE_SIZE, FC_HIDDEN)
    w2, b2 = lin(ks[4], ks[5], FC_HIDDEN, FC_HIDDEN)
    w3, b3 = lin(ks[6], ks[7], FC_HIDDEN, ACTION_SIZE)
    return dict(wg=wg, bg=bg, w1=w1, b1=b1, w2=w2, b2=b2, w3=w3, b3=b3)


def prepare_params(params, adj=None):
    """One-time packing: 2 slabs instead of 8 tiny arrays; constant adj cast/pad
    hoisted here (not per call)."""
    w1 = jnp.zeros((FC_HIDDEN, FC_HIDDEN), jnp.float32).at[:GCN_HIDDEN, :].set(params["w1"])
    w3 = jnp.zeros((FC_HIDDEN, FC_HIDDEN), jnp.float32).at[:, :ACTION_SIZE].set(params["w3"])
    w_slab = jnp.stack([w1, params["w2"], w3]).astype(jnp.bfloat16)       # (3,128,128) bf16

    v = jnp.zeros((8, FC_HIDDEN), jnp.float32)
    v = v.at[ROW_WG, :GCN_HIDDEN].set(params["wg"][0])
    v = v.at[ROW_BG, :GCN_HIDDEN].set(params["bg"][0])
    v = v.at[ROW_B1, :].set(params["b1"][0])
    v = v.at[ROW_B2, :].set(params["b2"][0])
    v = v.at[ROW_B3, :ACTION_SIZE].set(params["b3"][0])                   # (8,128) f32

    packed = dict(w=w_slab, v=v)
    if adj is not None:
        adj_p = jnp.zeros((M_PAD, M_PAD), jnp.float32).at[:NUM_CELLS, :NUM_CELLS].set(adj)
        packed["adj"] = adj_p.astype(jnp.bfloat16)                         # (48,48) bf16
    return packed


# ------------------------------ wrappers ------------------------------------

_VMEM = pl.BlockSpec(memory_space=pltpu.MemorySpace.VMEM)

_COST_SINGLE = pl.CostEstimate(
    flops=2 * M_PAD * FC_HIDDEN * (3 * FC_HIDDEN + M_PAD),
    transcendentals=0,
    bytes_accessed=(3 * FC_HIDDEN * FC_HIDDEN * 2 + 8 * FC_HIDDEN * 4
                    + M_PAD * M_PAD * 2 + M_PAD * 4 + M_PAD * FC_HIDDEN * 4),
)


def dqn_with_spatial(x, packed, *, identity_adj=True):
    """Single-state forward of DQNWithSpatial.  x: (state_size, num_cells)."""
    # x.transpose(0, 1) from the PyTorch forward; with state_size == 1 it is a reshape.
    xt = jnp.pad(x.reshape(NUM_CELLS, STATE_SIZE),
                 ((0, M_PAD - NUM_CELLS), (0, 0)))                         # (48, 1) f32
    if identity_adj:
        kernel, args = dqn_rows_kernel, (xt, packed["w"], packed["v"])
    else:
        kernel, args = dqn_adj_kernel, (xt, packed["adj"], packed["w"], packed["v"])
    out = pl.pallas_call(
        kernel,
        out_shape=jax.ShapeDtypeStruct((M_PAD, FC_HIDDEN), jnp.float32),
        in_specs=[_VMEM] * len(args),
        out_specs=_VMEM,
        cost_estimate=_COST_SINGLE,
    )(*args)
    return out[:NUM_CELLS, :ACTION_SIZE]                                   # (36, action_size)


def dqn_with_spatial_batched(xs, packed, *, tile_rows=48):
    """Batched forward over B states with identity adjacency: M = B*num_cells
    rows, grid over row tiles marked "parallel" (dual-TC on v7x).  Use
    tile_rows=256..512 for large batches."""
    # TODO(synk): general (non-identity) adjacency in the batched path would need a
    # per-state block-diagonal adj matmul; only the identity-adj case is implemented.
    b = xs.shape[0]
    rows = xs.reshape(b * NUM_CELLS, STATE_SIZE)            # state_size == 1 transpose
    m = rows.shape[0]
    m_pad = pl.cdiv(m, tile_rows) * tile_rows
    rows = jnp.pad(rows, ((0, m_pad - m), (0, 0)))
    grid = (m_pad // tile_rows,)
    cost = pl.CostEstimate(
        flops=2 * m_pad * FC_HIDDEN * 3 * FC_HIDDEN,
        transcendentals=0,
        bytes_accessed=(3 * FC_HIDDEN * FC_HIDDEN * 2 + 8 * FC_HIDDEN * 4
                        + m_pad * 4 + m_pad * FC_HIDDEN * 4),
    )
    out = pl.pallas_call(
        dqn_rows_kernel,
        out_shape=jax.ShapeDtypeStruct((m_pad, FC_HIDDEN), jnp.float32),
        grid_spec=pltpu.PrefetchScalarGridSpec(
            num_scalar_prefetch=0,
            grid=grid,
            in_specs=[pl.BlockSpec((tile_rows, STATE_SIZE), lambda i: (i, 0)),
                      pl.BlockSpec((3, FC_HIDDEN, FC_HIDDEN), lambda i: (0, 0, 0)),
                      pl.BlockSpec((8, FC_HIDDEN), lambda i: (0, 0))],
            out_specs=pl.BlockSpec((tile_rows, FC_HIDDEN), lambda i: (i, 0))),
        compiler_params=pltpu.CompilerParams(dimension_semantics=("parallel",)),
        cost_estimate=cost,
    )(rows, packed["w"], packed["v"])
    return out[:m].reshape(b, NUM_CELLS, FC_HIDDEN)[:, :, :ACTION_SIZE]


# ------------------------------ references ----------------------------------

def _bf16_dot(a, b):
    return jnp.dot(a.astype(jnp.bfloat16), b.astype(jnp.bfloat16),
                   preferred_element_type=jnp.float32)


def _ref_head(g, p):
    h1 = jax.nn.relu(_bf16_dot(g, p["w1"]) + p["b1"])
    h2 = jax.nn.relu(_bf16_dot(h1, p["w2"]) + p["b2"])
    return _bf16_dot(h2, p["w3"]) + p["b3"]


def ref_identity(x, p):
    g = jax.nn.relu(x.T * p["wg"] + p["bg"])
    return _ref_head(g, p)


def ref_adj(x, adj, p):
    g_in = (x.T * p["wg"]).astype(jnp.bfloat16)
    g = jax.nn.relu(jnp.dot(adj.astype(jnp.bfloat16), g_in,
                            preferred_element_type=jnp.float32) + p["bg"])
    return _ref_head(g, p)


def ref_f32(x, adj, p):
    g = jax.nn.relu((adj @ x.T) @ p["wg"] + p["bg"])
    h1 = jax.nn.relu(g @ p["w1"] + p["b1"])
    h2 = jax.nn.relu(h1 @ p["w2"] + p["b2"])
    return h2 @ p["w3"] + p["b3"]


# --------------------------------- main --------------------------------------

if __name__ == "__main__":
    key = jax.random.PRNGKey(0)
    kx, kb, kp = jax.random.split(key, 3)

    x = jax.random.normal(kx, (STATE_SIZE, NUM_CELLS), jnp.float32)
    adj = jnp.eye(NUM_CELLS, dtype=jnp.float32)              # adj = np.eye(num_cells)
    params = init_params(kp)
    packed = prepare_params(params, adj=adj)

    # single state, identity adjacency (the driver's case: adj matmul skipped)
    out_id = dqn_with_spatial(x, packed, identity_adj=True)
    # single state, general adjacency path (same result here since adj == I)
    out_adj = dqn_with_spatial(x, packed, identity_adj=False)
    # batched path: 8 states, 48-row tiles, "parallel" grid axis
    xs = jax.random.normal(kb, (8, STATE_SIZE, NUM_CELLS), jnp.float32)
    out_batch = dqn_with_spatial_batched(xs, packed, tile_rows=48)
    jax.block_until_ready((out_id, out_adj, out_batch))

    assert out_id.shape == (NUM_CELLS, ACTION_SIZE)
    assert out_adj.shape == (NUM_CELLS, ACTION_SIZE)
    assert out_batch.shape == (8, NUM_CELLS, ACTION_SIZE)

    # tight checks against references with matching bf16-operand / f32-accum semantics
    assert jnp.allclose(out_id, ref_identity(x, params), atol=1e-2, rtol=1e-2)
    assert jnp.allclose(out_adj, ref_adj(x, adj, params), atol=1e-2, rtol=1e-2)
    ref_b = jnp.stack([ref_identity(xs[i], params) for i in range(xs.shape[0])])
    assert jnp.allclose(out_batch, ref_b, atol=1e-2, rtol=1e-2)

    # loose check against the original all-f32 PyTorch module semantics.
    # TODO(synk): activations/weights are cast to bf16 before each MXU op (f32
    # accumulate) — a deliberate precision change vs. the all-f32 module.
    ref32 = ref_f32(x, adj, params)
    assert jnp.allclose(out_id, ref32, atol=1e-1, rtol=1e-1)
    assert jnp.allclose(out_adj, ref32, atol=1e-1, rtol=1e-1)

    print("KERNEL_OK")
</pallas_src>

<mosaic_0001>
module attributes {stable_mosaic.version = 11 : i64} {
  func.func @dqn_rows_kernel(%arg0: memref<48x1xf32, #tpu.memory_space<vmem>>, %arg1: memref<3x128x128xbf16, #tpu.memory_space<vmem>>, %arg2: memref<8x128xf32, #tpu.memory_space<vmem>>, %arg3: memref<48x128xf32, #tpu.memory_space<vmem>>) attributes {dimension_semantics = [], scalar_prefetch = 0 : i64, scratch_operands = 0 : i64, tpu.core_type = #tpu.core_type<tc>} {
    %c0 = arith.constant 0 : index
    %c0_0 = arith.constant 0 : index
    %0 = vector.load %arg2[%c0, %c0_0] : memref<8x128xf32, #tpu.memory_space<vmem>>, vector<1x128xf32>
    %c1 = arith.constant 1 : index
    %c0_1 = arith.constant 0 : index
    %1 = vector.load %arg2[%c1, %c0_1] : memref<8x128xf32, #tpu.memory_space<vmem>>, vector<1x128xf32>
    %c0_2 = arith.constant 0 : index
    %c0_3 = arith.constant 0 : index
    %2 = vector.load %arg0[%c0_2, %c0_3] : memref<48x1xf32, #tpu.memory_space<vmem>>, vector<48x1xf32>
    %3 = vector.broadcast %2 : vector<48x1xf32> to vector<48x128xf32>
    %4 = vector.broadcast %0 : vector<1x128xf32> to vector<48x128xf32>
    %5 = arith.mulf %3, %4 : vector<48x128xf32>
    %6 = vector.broadcast %1 : vector<1x128xf32> to vector<48x128xf32>
    %7 = arith.addf %5, %6 : vector<48x128xf32>
    %cst = arith.constant 0.000000e+00 : f32
    %8 = vector.broadcast %cst : f32 to vector<48x128xf32>
    %9 = arith.maximumf %7, %8 : vector<48x128xf32>
    %c2 = arith.constant 2 : index
    %c0_4 = arith.constant 0 : index
    %10 = vector.load %arg2[%c2, %c0_4] : memref<8x128xf32, #tpu.memory_space<vmem>>, vector<1x128xf32>
    %c3 = arith.constant 3 : index
    %c0_5 = arith.constant 0 : index
    %11 = vector.load %arg2[%c3, %c0_5] : memref<8x128xf32, #tpu.memory_space<vmem>>, vector<1x128xf32>
    %c4 = arith.constant 4 : index
    %c0_6 = arith.constant 0 : index
    %12 = vector.load %arg2[%c4, %c0_6] : memref<8x128xf32, #tpu.memory_space<vmem>>, vector<1x128xf32>
    %13 = arith.truncf %9 : vector<48x128xf32> to vector<48x128xbf16>
    %c0_7 = arith.constant 0 : index
    %c0_8 = arith.constant 0 : index
    %c0_9 = arith.constant 0 : index
    %14 = vector.load %arg1[%c0_7, %c0_8, %c0_9] : memref<3x128x128xbf16, #tpu.memory_space<vmem>>, vector<1x128x128xbf16>
    %15 = vector.shape_cast %14 : vector<1x128x128xbf16> to vector<128x128xbf16>
    %cst_10 = arith.constant dense<0.000000e+00> : vector<48x128xf32>
    %16 = tpu.matmul %13, %15, %cst_10 {dimension_numbers = #tpu.dot_dimension_numbers<[1], [0], [0], [1], [0, 0, 1, 1], [], []>} : vector<48x128xbf16>, vector<128x128xbf16>, vector<48x128xf32> -> vector<48x128xf32>
    %17 = vector.broadcast %10 : vector<1x128xf32> to vector<48x128xf32>
    %18 = arith.addf %16, %17 : vector<48x128xf32>
    %cst_11 = arith.constant 0.000000e+00 : f32
    %19 = vector.broadcast %cst_11 : f32 to vector<48x128xf32>
    %20 = arith.maximumf %18, %19 : vector<48x128xf32>
    %21 = arith.truncf %20 : vector<48x128xf32> to vector<48x128xbf16>
    %c1_12 = arith.constant 1 : index
    %c0_13 = arith.constant 0 : index
    %c0_14 = arith.constant 0 : index
    %22 = vector.load %arg1[%c1_12, %c0_13, %c0_14] : memref<3x128x128xbf16, #tpu.memory_space<vmem>>, vector<1x128x128xbf16>
    %23 = vector.shape_cast %22 : vector<1x128x128xbf16> to vector<128x128xbf16>
    %cst_15 = arith.constant dense<0.000000e+00> : vector<48x128xf32>
    %24 = tpu.matmul %21, %23, %cst_15 {dimension_numbers = #tpu.dot_dimension_numbers<[1], [0], [0], [1], [0, 0, 1, 1], [], []>} : vector<48x128xbf16>, vector<128x128xbf16>, vector<48x128xf32> -> vector<48x128xf32>
    %25 = vector.broadcast %11 : vector<1x128xf32> to vector<48x128xf32>
    %26 = arith.addf %24, %25 : vector<48x128xf32>
    %cst_16 = arith.constant 0.000000e+00 : f32
    %27 = vector.broadcast %cst_16 : f32 to vector<48x128xf32>
    %28 = arith.maximumf %26, %27 : vector<48x128xf32>
    %29 = arith.truncf %28 : vector<48x128xf32> to vector<48x128xbf16>
    %c2_17 = arith.constant 2 : index
    %c0_18 = arith.constant 0 : index
    %c0_19 = arith.constant 0 : index
    %30 = vector.load %arg1[%c2_17, %c0_18, %c0_19] : memref<3x128x128xbf16, #tpu.memory_space<vmem>>, vector<1x128x128xbf16>
    %31 = vector.shape_cast %30 : vector<1x128x128xbf16> to vector<128x128xbf16>
    %cst_20 = arith.constant dense<0.000000e+00> : vector<48x128xf32>
    %32 = tpu.matmul %29, %31, %cst_20 {dimension_numbers = #tpu.dot_dimension_numbers<[1], [0], [0], [1], [0, 0, 1, 1], [], []>} : vector<48x128xbf16>, vector<128x128xbf16>, vector<48x128xf32> -> vector<48x128xf32>
    %33 = vector.broadcast %12 : vector<1x128xf32> to vector<48x128xf32>
    %34 = arith.addf %32, %33 : vector<48x128xf32>
    %c0_21 = arith.constant 0 : index
    %c0_22 = arith.constant 0 : index
    %35 = vector.load %arg3[%c0_21, %c0_22] : memref<48x128xf32, #tpu.memory_space<vmem>>, vector<48x128xf32>
    tpu.vector_store %arg3[%c0_21, %c0_22], %34 {strides = array<i32>} : memref<48x128xf32, #tpu.memory_space<vmem>>, vector<48x128xf32>,
    return
  }
}

</mosaic_0001>

<bundles_post_ra>
// kernel: tpu_custom_call.1
= control target key start
LH: loop header
LB: loop body
LE: loop exit
PB: predicated region body
PF: predicated region fallthrough
CT: control target
= control target key end

     0   :  { %8 = vsyncpa [#allocation3], 0  ;;  %s899_s0 = inlined_call_operand.vmem [shape: f32[48,1], index: 0, kind: input, shape index: {}]   ;;  %s900_s1 = inlined_call_operand.hbm [shape: bf16[3,128,128], index: 1, kind: input, shape index: {}]   ;;  %s901_s2 = inlined_call_operand.vmem [shape: f32[8,128], index: 2, kind: input, shape index: {}]   ;;  %s902_s3 = inlined_call_operand.hbm [shape: f32[48,128], index: 3, kind: output, shape index: {}]  }
   0x1   :  { %9 = vsyncpa [#allocation4], 0  ;;  %s763_s12 = smov [#allocation2]   ;;  %s715_s16 = scalar_lea.hbm %s900_s1, 3072 }
   0x2   :  { %s17_s13 = sshll.u32 %s763_s12, 4  ;;  %p716_p0 = scmp.ne.s32.totalorder %s900_s1, %s715_s16  ;;  %s18_s13 = int_to_ptr.vmem [resolvable:$true] %s17_s13 }
   0x3   :  { %p719_p1 = scmp.lt.u32.totalorder %s715_s16, %s900_s1 }
   0x5   :  { %p721_p2 = pnand %p719_p1, %p716_p0 }
   0x7   :  { %724 = shalt.err (!%p721_p2)
}
   0x8   :  { %s725_s21 = scalar_lea.vmem %s18_s13, 3072  ;;  %p730_p4 = scmp.lt.s32.totalorder %s18_s13, %s18_s13 }
   0x9   :  { %p726_p3 = scmp.ne.s32.totalorder %s18_s13, %s725_s21  ;;  %p731_p5 = scmp.lt.s32.totalorder %s725_s21, %s725_s21 }
   0xb   :  { %p732_p6 = por %p731_p5, %p730_p4 }
   0xd   :  { %p733_p7 = pnand %p732_p6, %p726_p3 }
   0xf   :  { %736 = shalt.err (!%p733_p7)
}
  0x10   :  { %s764_s22 = smov 64   ;;  %s765_s23 = smov 4  }
  0x11   :  { %23 = dma.hbm_to_vmem [thread:$0]  %s900_s1, 3072, %s18_s13, [#allocation3], %s764_s22, %s764_s22, %s765_s23  }
  0x12   :  { %759 = dma.done.wait [#allocation3], 3072  }
  0x13   :  { %760 = vsyncadd [#allocation3], 4294964224  ;;  %v766_v0 = vmov 0   ;;  %v767_v1 = vmov 0.0   ;;  %v34_v2 = vld [vmem:[%s899_s0 + $0x10] sm:$0xff]  ;;  %v32_v3 = vld [vmem:[%s899_s0] sm:$0xff] }
  0x14   :  { %690 = vset.pattern.permute.xlu1 %v766_v0  ;;  %689 = vset.pattern.permute.xlu0 %v766_v0  ;;  %v35_v4 = vld [vmem:[%s899_s0 + $0x18] sm:$0xff]  ;;  %v33_v5 = vld [vmem:[%s899_s0 + $0x8] sm:$0xff]  ;;  %v692_v7 = vld [vmem:[#allocation2 + $0x8] sm:$0xff]   ;;  %vm768_vm0 = vmmov 0   ;;  %s769_s19 = smov [#allocation5]  }
  0x15   :  { %580 = vmatprep.subr.bf16.mxu0 %v767_v1  ;;  %608 = vmatprep.subr.bf16.mxu1 %v767_v1  ;;  %v691_v6 = vld [vmem:[#allocation2] sm:$0xff]   ;;  %v37_v8 = vld [vmem:[%s899_s0 + $0x28] sm:$0xff]  ;;  %v36_v9 = vld [vmem:[%s899_s0 + $0x20] sm:$0xff]  ;;  %s506_s20 = sshll.u32 %s769_s19, 4  ;;  %s507_s20 = int_to_ptr.vmem [resolvable:$true] %s506_s20 }
  0x16   :  { %50 = vperm.xlu1 %690, %v34_v2   ;;  %40 = vperm.xlu0 %689, %v32_v3   ;;  %v693_v10 = vld [vmem:[#allocation2 + $0x10] sm:$0xff]   ;;  %v694_v11 = vld [vmem:[#allocation2 + $0x18] sm:$0xff]   ;;  %v695_v12 = vld [vmem:[#allocation2 + $0x20] sm:$0xff]   ;;  %p742_p9 = scmp.lt.s32.totalorder %s507_s20, %s507_s20 }
  0x17   :  { %581 = vmatpush3.bf16.msra.mxu0 %v691_v6  ;;  %596 = vmatprep.mubr.msk.bf16.mxu0 %vm768_vm0, %v767_v1  ;;  %v696_v13 = vld [vmem:[#allocation2 + $0x28] sm:$0xff]   ;;  %v697_v14 = vld [vmem:[#allocation2 + $0x30] sm:$0xff]   ;;  %v698_v15 = vld [vmem:[#allocation2 + $0x38] sm:$0xff]  }
  0x18   :  { %582 = vmatprep.subr.bf16.mxu0 %v767_v1  ;;  %624 = vmatprep.mubr.msk.bf16.mxu1 %vm768_vm0, %v767_v1  ;;  %v699_v16 = vld [vmem:[#allocation2 + $0x40] sm:$0xff]   ;;  %v700_v17 = vld [vmem:[#allocation2 + $0x48] sm:$0xff]   ;;  %v701_v18 = vld [vmem:[#allocation2 + $0x50] sm:$0xff]  }
  0x19   :  { %609 = vmatpush3.bf16.msra.mxu1 %v699_v16  ;;  %v702_v19 = vld [vmem:[#allocation2 + $0x58] sm:$0xff]   ;;  %v703_v20 = vld [vmem:[#allocation2 + $0x60] sm:$0xff]   ;;  %v704_v21 = vld [vmem:[#allocation2 + $0x68] sm:$0xff]  }
  0x1a   :  { %55 = vperm.xlu1 %690, %v35_v4   ;;  %45 = vperm.xlu0 %689, %v33_v5   ;;  %v518_v22 = vld [vmem:[%s901_s2] ss:$0 sm:$0xff]  ;;  %v519_v26 = vld [vmem:[%s901_s2 + $0x1] ss:$0 sm:$0xff]  ;;  %v705_v51 = vld [vmem:[#allocation2 + $0x70] sm:$0xff]  }
  0x1b   :  { %583 = vmatpush3.bf16.msra.mxu0 %v692_v7  ;;  %610 = vmatprep.subr.bf16.mxu1 %v767_v1  ;;  %v706_v52 = vld [vmem:[#allocation2 + $0x78] sm:$0xff]   ;;  %v707_v53 = vld [vmem:[#allocation2 + $0x80] sm:$0xff]   ;;  %v708_v54 = vld [vmem:[#allocation2 + $0x88] sm:$0xff]  }
  0x1c   :  { %584 = vmatprep.subr.bf16.mxu0 %v767_v1  ;;  %v709_v55 = vld [vmem:[#allocation2 + $0x90] sm:$0xff]   ;;  %v710_v56 = vld [vmem:[#allocation2 + $0x98] sm:$0xff]   ;;  %v711_v57 = vld [vmem:[#allocation2 + $0xa0] sm:$0xff]  }
  0x1d   :  { %611 = vmatpush3.bf16.msra.mxu1 %v700_v17  ;;  %v712_v58 = vld [vmem:[#allocation2 + $0xa8] sm:$0xff]  }
  0x1e   :  { %65 = vperm.xlu1 %690, %v37_v8   ;;  %60 = vperm.xlu0 %689, %v36_v9   ;;  %v520_v59 = vld [vmem:[%s901_s2 + $0x2] ss:$0 sm:$0xff] }
  0x1f   :  { %585 = vmatpush3.bf16.msra.mxu0 %v693_v10  ;;  %612 = vmatprep.subr.bf16.mxu1 %v767_v1 }
  0x20   :  { %586 = vmatprep.subr.bf16.mxu0 %v767_v1 }
  0x21   :  { %613 = vmatpush3.bf16.msra.mxu1 %v701_v18 }
  0x22   :  { %614 = vmatprep.subr.bf16.mxu1 %v767_v1 }
  0x23   :  { %587 = vmatpush3.bf16.msra.mxu0 %v694_v11 }
  0x24   :  { %588 = vmatprep.subr.bf16.mxu0 %v767_v1 }
  0x25   :  { %615 = vmatpush3.bf16.msra.mxu1 %v702_v19 }
  0x26   :  { %616 = vmatprep.subr.bf16.mxu1 %v767_v1 }
  0x27   :  { %589 = vmatpush3.bf16.msra.mxu0 %v695_v12 }
  0x28   :  { %590 = vmatprep.subr.bf16.mxu0 %v767_v1 }
  0x29   :  { %617 = vmatpush3.bf16.msra.mxu1 %v703_v20 }
  0x2a   :  { %618 = vmatprep.subr.bf16.mxu1 %v767_v1 }
  0x2b   :  { %591 = vmatpush3.bf16.msra.mxu0 %v696_v13 }
  0x2c   :  { %592 = vmatprep.subr.bf16.mxu0 %v767_v1 }
  0x2d   :  { %619 = vmatpush3.bf16.msra.mxu1 %v704_v21 }
  0x2e   :  { %620 = vmatprep.subr.bf16.mxu1 %v767_v1 }
  0x2f   :  { %593 = vmatpush3.bf16.msra.mxu0 %v697_v14 }
  0x30   :  { %594 = vmatprep.subr.bf16.mxu0 %v767_v1 }
  0x31   :  { %621 = vmatpush3.bf16.msra.mxu1 %v705_v51 }
  0x32   :  { %622 = vmatprep.subr.bf16.mxu1 %v767_v1 }
  0x33   :  { %595 = vmatpush3.bf16.msra.mxu0 %v698_v15 }
  0x34   :  { %636 = vmatprep.subr.bf16.mxu0 %v767_v1 }
  0x35   :  { %623 = vmatpush3.bf16.msra.mxu1 %v706_v52 }
  0x36   :  { %664 = vmatprep.subr.bf16.mxu1 %v767_v1 }
  0x95   :  { %v51_v23 = vpop.permute.xlu1 %50  ;;  %v41_v24 = vpop.permute.xlu0 %40 }
  0x96   :  { %v72_v25 = vmul.f32 %v518_v22, %v41_v24  ;;  %v74_v31 = vmul.f32 %v518_v22, %v51_v23  ;;  %v713_v24 = vld [vmem:[#allocation2 + $0xb0] sm:$0xff]  }
  0x98   :  { %v82_v28 = vadd.f32 %v519_v26, %v72_v25  ;;  %v84_v36 = vadd.f32 %v519_v26, %v74_v31  ;;  %v714_v25 = vld [vmem:[#allocation2 + $0xb8] sm:$0xff]  }
  0x99   :  { %v46_v27 = vpop.permute.xlu0 %45  ;;  %v56_v30 = vpop.permute.xlu1 %55 }
  0x9a   :  { %v73_v29 = vmul.f32 %v518_v22, %v46_v27  ;;  %v75_v32 = vmul.f32 %v518_v22, %v56_v30  ;;  %v88_v34 = vmax.f32 %v82_v28, 0.0  ;;  %v90_v41 = vmax.f32 %v84_v36, 0.0 }
  0x9c   :  { %v83_v33 = vadd.f32 %v519_v26, %v73_v29  ;;  %v85_v37 = vadd.f32 %v519_v26, %v75_v32 }
  0x9d   :  { %v66_v39 = vpop.permute.xlu1 %65  ;;  %v61_v40 = vpop.permute.xlu0 %60 }
  0x9e   :  { %v89_v35 = vmax.f32 %v83_v33, 0.0  ;;  %v91_v42 = vmax.f32 %v85_v37, 0.0  ;;  %v77_v43 = vmul.f32 %v518_v22, %v66_v39  ;;  %v76_v44 = vmul.f32 %v518_v22, %v61_v40 }
  0xa0   :  { %v97_v38 = vpack.c.bf16 %v89_v35, %v88_v34  ;;  %v87_v45 = vadd.f32 %v519_v26, %v77_v43  ;;  %v86_v46 = vadd.f32 %v519_v26, %v76_v44  ;;  %v98_v47 = vpack.c.bf16 %v91_v42, %v90_v41  ;;  %v529_v26 = vld [vmem:[%s901_s2 + $0x3] ss:$0 sm:$0xff] }
  0xa2   :  { %597 = vmatmul.mubr.bf16.vlgmr.msra.gmra.mrb[0].mxu0 %v97_v38  ;;  %v93_v48 = vmax.f32 %v87_v45, 0.0  ;;  %v92_v49 = vmax.f32 %v86_v46, 0.0 }
  0xa3   :  { %600 = vmatprep.mubr.msk.bf16.mxu0 %vm768_vm0, %v767_v1  ;;  %637 = vmatpush3.bf16.msra.mxu0 %v707_v53 }
  0xa4   :  { %v99_v50 = vpack.c.bf16 %v93_v48, %v92_v49  ;;  %638 = vmatprep.subr.bf16.mxu0 %v767_v1 }
  0xa7   :  { %639 = vmatpush3.bf16.msra.mxu0 %v708_v54 }
  0xa8   :  { %640 = vmatprep.subr.bf16.mxu0 %v767_v1 }
  0xaa   :  { %601 = vmatmul.mubr.bf16.gmra.mrb[4].mxu0 %v98_v47 }
  0xab   :  { %604 = vmatprep.mubr.msk.bf16.mxu0 %vm768_vm0, %v767_v1  ;;  %641 = vmatpush3.bf16.msra.mxu0 %v709_v55 }
  0xac   :  { %642 = vmatprep.subr.bf16.mxu0 %v767_v1 }
  0xaf   :  { %643 = vmatpush3.bf16.msra.mxu0 %v710_v56 }
  0xb0   :  { %644 = vmatprep.subr.bf16.mxu0 %v767_v1 }
  0xb2   :  { %605 = vmatmul.mubr.bf16.gmra.mrb[8].mxu0 %v99_v50 }
  0xb3   :  { %652 = vmatprep.mubr.msk.bf16.mxu0 %vm768_vm0, %v767_v1  ;;  %645 = vmatpush3.bf16.msra.mxu0 %v711_v57 }
  0xb4   :  { %646 = vmatprep.subr.bf16.mxu0 %v767_v1 }
  0xb7   :  { %647 = vmatpush3.bf16.msra.mxu0 %v712_v58 }
  0xb8   :  { %648 = vmatprep.subr.bf16.mxu0 %v767_v1 }
  0xbb   :  { %649 = vmatpush3.bf16.msra.mxu0 %v713_v24 }
  0xbc   :  { %650 = vmatprep.subr.bf16.mxu0 %v767_v1 }
  0xbf   :  { %651 = vmatpush3.bf16.msra.mxu0 %v714_v25 }
 0x175   :  { %v202_v60 = vpop.f32.mrb[0].mxu0 }
 0x176   :  { %v203_v61 = vadd.f32 %v520_v59, %v202_v60  ;;  %v598_v62 = vpop.f32.mrb[1].mxu0 }
 0x177   :  { %v205_v63 = vpop.f32.mrb[2].mxu0 }
 0x178   :  { %v206_v0 = vadd.f32 %v520_v59, %v205_v63  ;;  %v599_v2 = vpop.f32.mrb[3].mxu0  ;;  %v225_v3 = vmax.f32 %v203_v61, 0.0 }
 0x17a   :  { %v226_v4 = vmax.f32 %v206_v0, 0.0 }
 0x17c   :  { %v231_v5 = vpack.c.bf16 %v226_v4, %v225_v3 }
 0x17d   :  { %v210_v6 = vpop.f32.mrb[4].mxu0 }
 0x17e   :  { %v211_v7 = vadd.f32 %v520_v59, %v210_v6  ;;  %v602_v8 = vpop.f32.mrb[5].mxu0  ;;  %625 = vmatmul.mubr.bf16.vlgmr.msra.gmra.mrb[0].mxu1 %v231_v5 }
 0x17f   :  { %v213_v9 = vpop.f32.mrb[6].mxu0  ;;  %628 = vmatprep.mubr.msk.bf16.mxu1 %vm768_vm0, %v767_v1  ;;  %672 = vmatpush3.bf16.msra.mxu1 %v707_v53 }
 0x180   :  { %v214_v10 = vadd.f32 %v520_v59, %v213_v9  ;;  %v603_v11 = vpop.f32.mrb[7].mxu0  ;;  %665 = vmatprep.subr.bf16.mxu1 %v767_v1  ;;  %v227_v12 = vmax.f32 %v211_v7, 0.0 }
 0x182   :  { %v228_v13 = vmax.f32 %v214_v10, 0.0 }
 0x183   :  { %673 = vmatpush3.bf16.msra.mxu1 %v708_v54  ;;  %v538_v54 = vld [vmem:[%s901_s2 + $0x4] ss:$0 sm:$0xff]  ;;  %s737_s2 = scalar_lea.vmem %s507_s20, 768 }
 0x184   :  { %v232_v14 = vpack.c.bf16 %v228_v13, %v227_v12  ;;  %666 = vmatprep.subr.bf16.mxu1 %v767_v1  ;;  %p738_p8 = scmp.ne.s32.totalorder %s507_s20, %s737_s2  ;;  %p743_p10 = scmp.lt.s32.totalorder %s737_s2, %s737_s2 }
 0x185   :  { %v218_v15 = vpop.f32.mrb[8].mxu0 }
 0x186   :  { %v219_v16 = vadd.f32 %v520_v59, %v218_v15  ;;  %v606_v17 = vpop.f32.mrb[9].mxu0  ;;  %629 = vmatmul.mubr.bf16.gmra.mrb[4].mxu1 %v232_v14  ;;  %p744_p11 = por %p743_p10, %p742_p9 }
 0x187   :  { %v221_v18 = vpop.f32.mrb[10].mxu0  ;;  %632 = vmatprep.mubr.msk.bf16.mxu1 %vm768_vm0, %v767_v1  ;;  %674 = vmatpush3.bf16.msra.mxu1 %v709_v55 }
 0x188   :  { %v222_v19 = vadd.f32 %v520_v59, %v221_v18  ;;  %v607_v20 = vpop.f32.mrb[11].mxu0  ;;  %667 = vmatprep.subr.bf16.mxu1 %v767_v1  ;;  %v229_v21 = vmax.f32 %v219_v16, 0.0  ;;  %p745_p12 = pnand %p744_p11, %p738_p8 }
 0x18a   :  { %v230_v22 = vmax.f32 %v222_v19, 0.0 }
 0x18b   :  { %675 = vmatpush3.bf16.msra.mxu1 %v710_v56 }
 0x18c   :  { %v233_v23 = vpack.c.bf16 %v230_v22, %v229_v21  ;;  %668 = vmatprep.subr.bf16.mxu1 %v767_v1 }
 0x18e   :  { %633 = vmatmul.mubr.bf16.gmra.mrb[8].mxu1 %v233_v23 }
 0x18f   :  { %676 = vmatpush3.bf16.msra.mxu1 %v711_v57  ;;  %656 = vmatprep.mubr.msk.bf16.mxu1 %vm768_vm0, %v767_v1 }
 0x190   :  { %669 = vmatprep.subr.bf16.mxu1 %v767_v1 }
 0x193   :  { %677 = vmatpush3.bf16.msra.mxu1 %v712_v58 }
 0x194   :  { %670 = vmatprep.subr.bf16.mxu1 %v767_v1 }
 0x197   :  { %678 = vmatpush3.bf16.msra.mxu1 %v713_v24 }
 0x198   :  { %671 = vmatprep.subr.bf16.mxu1 %v767_v1 }
 0x19b   :  { %679 = vmatpush3.bf16.msra.mxu1 %v714_v25 }
 0x251   :  { %v337_v27 = vpop.f32.mrb[0].mxu1 }
 0x252   :  { %v338_v28 = vadd.f32 %v529_v26, %v337_v27  ;;  %v626_v29 = vpop.f32.mrb[1].mxu1 }
 0x253   :  { %v340_v30 = vpop.f32.mrb[2].mxu1 }
 0x254   :  { %v341_v31 = vadd.f32 %v529_v26, %v340_v30  ;;  %v627_v32 = vpop.f32.mrb[3].mxu1  ;;  %v360_v33 = vmax.f32 %v338_v28, 0.0 }
 0x256   :  { %v361_v34 = vmax.f32 %v341_v31, 0.0 }
 0x258   :  { %v366_v35 = vpack.c.bf16 %v361_v34, %v360_v33 }
 0x259   :  { %v345_v36 = vpop.f32.mrb[4].mxu1 }
 0x25a   :  { %v346_v37 = vadd.f32 %v529_v26, %v345_v36  ;;  %v630_v38 = vpop.f32.mrb[5].mxu1  ;;  %653 = vmatmul.mubr.bf16.vlgmr.msra.gmra.mrb[12].mxu0 %v366_v35 }
 0x25b   :  { %v348_v39 = vpop.f32.mrb[6].mxu1 }
 0x25c   :  { %v349_v40 = vadd.f32 %v529_v26, %v348_v39  ;;  %v631_v41 = vpop.f32.mrb[7].mxu1  ;;  %v362_v42 = vmax.f32 %v346_v37, 0.0 }
 0x25e   :  { %v363_v43 = vmax.f32 %v349_v40, 0.0 }
 0x260   :  { %v367_v44 = vpack.c.bf16 %v363_v43, %v362_v42 }
 0x261   :  { %v353_v45 = vpop.f32.mrb[8].mxu1 }
 0x262   :  { %v354_v46 = vadd.f32 %v529_v26, %v353_v45  ;;  %v634_v47 = vpop.f32.mrb[9].mxu1  ;;  %657 = vmatmul.mubr.bf16.vlgmr.msra.gmra.mrb[12].mxu1 %v367_v44 }
 0x263   :  { %v356_v48 = vpop.f32.mrb[10].mxu1  ;;  %660 = vmatprep.mubr.msk.bf16.mxu1 %vm768_vm0, %v767_v1 }
 0x264   :  { %v357_v49 = vadd.f32 %v529_v26, %v356_v48  ;;  %v635_v50 = vpop.f32.mrb[11].mxu1  ;;  %v364_v51 = vmax.f32 %v354_v46, 0.0 }
 0x266   :  { %v365_v52 = vmax.f32 %v357_v49, 0.0 }
 0x268   :  { %v368_v53 = vpack.c.bf16 %v365_v52, %v364_v51 }
 0x26a   :  { %661 = vmatmul.mubr.bf16.gmra.mrb[16].mxu1 %v368_v53 }
 0x32d   :  { %v472_v55 = vpop.f32.mrb[12].mxu0 }
 0x32e   :  { %v473_v56 = vadd.f32 %v538_v54, %v472_v55  ;;  %v654_v57 = vpop.f32.mrb[13].mxu0 }
 0x32f   :  { %v475_v58 = vpop.f32.mrb[14].mxu0 }
 0x330   :  { %495 = vst [vmem:[#allocation5] sm:$0xff] %v473_v56  ;;  %v476_v59 = vadd.f32 %v538_v54, %v475_v58  ;;  %v655_v60 = vpop.f32.mrb[15].mxu0 }
 0x332   :  { %496 = vst [vmem:[#allocation5 + $0x8] sm:$0xff] %v476_v59 }
 0x335   :  { %v480_v61 = vpop.f32.mrb[12].mxu1 }
 0x336   :  { %v481_v1 = vadd.f32 %v538_v54, %v480_v61  ;;  %v658_v62 = vpop.f32.mrb[13].mxu1 }
 0x337   :  { %v483_v63 = vpop.f32.mrb[14].mxu1 }
 0x338   :  { %497 = vst [vmem:[#allocation5 + $0x10] sm:$0xff] %v481_v1  ;;  %v484_v0 = vadd.f32 %v538_v54, %v483_v63  ;;  %v659_v2 = vpop.f32.mrb[15].mxu1 }
 0x33a   :  { %498 = vst [vmem:[#allocation5 + $0x18] sm:$0xff] %v484_v0 }
 0x33d   :  { %v488_v3 = vpop.f32.mrb[16].mxu1 }
 0x33e   :  { %v489_v4 = vadd.f32 %v538_v54, %v488_v3  ;;  %v662_v5 = vpop.f32.mrb[17].mxu1 }
 0x33f   :  { %v491_v6 = vpop.f32.mrb[18].mxu1 }
 0x340   :  { %499 = vst [vmem:[#allocation5 + $0x20] sm:$0xff] %v489_v4  ;;  %v492_v7 = vadd.f32 %v538_v54, %v491_v6  ;;  %v663_v8 = vpop.f32.mrb[19].mxu1 }
 0x342   :  { %500 = vst [vmem:[#allocation5 + $0x28] sm:$0xff] %v492_v7 }
 0x343   :  { %748 = shalt.err (!%p745_p12)
}
 0x344   :  { %s749_s23 = scalar_lea.hbm %s902_s3, 768 }
 0x345   :  { %p750_p13 = scmp.ne.s32.totalorder %s902_s3, %s749_s23  ;;  %p753_p0 = scmp.lt.u32.totalorder %s749_s23, %s902_s3 }
 0x347   :  { %p755_p1 = pnand %p753_p0, %p750_p13 }
 0x349   :  { %758 = shalt.err (!%p755_p1)
}
 0x34a   :  { %s770_s28 = smov 128   ;;  %s771_s29 = smov 8  }
 0x34b   :  { %512 = dma.vmem_to_hbm [thread:$0]  %s507_s20, 768, %s902_s3, [#allocation4], %s770_s28, %s770_s28, %s771_s29  }
 0x34c   :  { %761 = dma.done.wait [#allocation4], 768  }
 0x34d   :  { %762 = vsyncadd [#allocation4], 4294966528 }
 0x34e   :  { %516 = vsyncpa [#allocation3], 1 }
 0x34f   :  { %517 = vsyncpa [#allocation4], 1 }

</bundles_post_ra>
